<compile_context>
chip_gen: v5e
topology: v5e:2x2
jax: 0.10.0
libtpu: 0.0.40
codegen_flags: <defaults>
</compile_context>

<pallas_src>
import functools

import jax
import jax.numpy as jnp
import numpy as np
from jax.experimental import pallas as pl
from jax.experimental.pallas import tpu as pltpu

BATCH_TILE = 8  # one sublane tile


def _rnn_kernel(x2d_ref, wih_ref, whh_ref, b_ref, h0_ref, fcw_ref, fcb_ref,
                out_ref, *, seq_len, batch_pad):
    """Full RNN recurrence + fc head in a single invocation.

    x2d_ref: (T*Bp, I) time-major, batch-padded, flattened input
    wih_ref: (I, H)    W_ih^T
    whh_ref: (H, H)    W_hh^T
    b_ref:   (1, H)    b_ih + b_hh
    h0_ref:  (Bp, H)   initial hidden state (padded rows = 0)
    fcw_ref: (H, 1)    W_fc^T
    fcb_ref: (1, 1)    b_fc
    out_ref: (Bp, 1)   fc(h_T)
    """
    # Hoist loop-invariant loads once (never re-load inside the time loop).
    wih = wih_ref[...]                        # (I, H)
    whh = whh_ref[...]                        # (H, H)
    b = b_ref[...]                            # (1, H)

    # Hoisted input projection: one matmul for all T steps, off the serial
    # critical path; bias folded in with a single broadcast.
    xp = jnp.dot(x2d_ref[...], wih,
                 preferred_element_type=jnp.float32) + b    # (T*Bp, H)

    # Serial recurrence.  batch_pad == 8 (one sublane tile), so every static
    # slice below is (8,128)-tile aligned — no cross-sublane shuffles on the
    # critical path.  Only the truly recurrent h @ W_hh^T matmul remains in
    # the loop; the static unroll lets Mosaic keep the loop-invariant W_hh
    # staged in the MXU across steps (RHS push hoisted out of the unroll).
    # TODO(synk): on v7x, explicit MXU driving (matmul_acc_lhs with the MRB
    # accumulator initialized to x_t) could also drop the per-step VPU add.
    h = h0_ref[...]                           # (Bp, H)
    for t in range(seq_len):
        x_t = xp[t * batch_pad:(t + 1) * batch_pad, :]      # (Bp, H), aligned
        h = jnp.tanh(x_t + jnp.dot(h, whh,
                                   preferred_element_type=jnp.float32))

    # Fused fc head: avoids a separate microsecond-scale XLA dispatch for a
    # (B,H)@(H,1) matmul outside the kernel.
    out_ref[...] = (jnp.dot(h, fcw_ref[...],
                            preferred_element_type=jnp.float32)
                    + fcb_ref[...])


@functools.partial(jax.jit, static_argnames=("input_size", "hidden_dim"))
def protein_rnn_forward(x, kparams, h0, *, input_size, hidden_dim):
    """Forward pass of ProteinRNN.

    x:       (B, T, input_size) — or (B, T) when input_size == 1
    kparams: kernel-layout params from bake_kernel_params (pre-transposed)
    h0:      (n_layers=1, B, hidden_dim) initial hidden state
    returns: (B, 1)
    """
    if input_size == 1 and x.ndim == 2:
        x = x[:, :, None]
    B, T, I = x.shape
    H = hidden_dim
    Bp = ((B + BATCH_TILE - 1) // BATCH_TILE) * BATCH_TILE   # pad to sublane tile

    # Single layout chain on x: time-major, pad batch to Bp, flatten to
    # (T*Bp, I) so the kernel does one well-shaped input-projection matmul
    # and every per-step slice starts on a sublane-tile boundary.
    x_tm = jnp.transpose(x, (1, 0, 2)).astype(jnp.float32)   # (T, B, I)
    x_tm = jnp.pad(x_tm, ((0, 0), (0, Bp - B), (0, 0)))      # (T, Bp, I)
    x2d = x_tm.reshape(T * Bp, I)

    # Padded h0: real rows from the torch.rand-analog sample, pad rows zero
    # (rows are independent in the recurrence; pad rows are sliced off below).
    h0_p = jnp.pad(h0[0].astype(jnp.float32), ((0, Bp - B), (0, 0)))  # (Bp, H)

    kernel = functools.partial(_rnn_kernel, seq_len=T, batch_pad=Bp)
    out_p = pl.pallas_call(
        kernel,
        out_shape=jax.ShapeDtypeStruct((Bp, 1), jnp.float32),
        # Single invocation, no grid: every operand is a full-array VMEM block
        # (all operands are tiny at these shapes).
        in_specs=[pl.BlockSpec(memory_space=pltpu.MemorySpace.VMEM)] * 7,
        out_specs=pl.BlockSpec(memory_space=pltpu.MemorySpace.VMEM),
    )(x2d, kparams["wih_t"], kparams["whh_t"], kparams["b"], h0_p,
      kparams["fcw_t"], kparams["fcb"])

    return out_p[:B, :]                                      # (B, 1)


def init_params(key, input_size, hidden_dim):
    """Deterministic init matching nn.RNN / nn.Linear parameter shapes."""
    ks = jax.random.split(key, 6)
    k_rnn = 1.0 / np.sqrt(hidden_dim)
    u = lambda k, shape, bound: jax.random.uniform(
        k, shape, jnp.float32, -bound, bound)
    return {
        "w_ih": u(ks[0], (hidden_dim, input_size), k_rnn),
        "w_hh": u(ks[1], (hidden_dim, hidden_dim), k_rnn),
        "b_ih": u(ks[2], (hidden_dim,), k_rnn),
        "b_hh": u(ks[3], (hidden_dim,), k_rnn),
        "fc_w": u(ks[4], (1, hidden_dim), k_rnn),
        "fc_b": u(ks[5], (1,), k_rnn),
    }


def bake_kernel_params(params):
    """One-time bake of the kernel-friendly parameter layout.

    Done once at init so the per-call site is just the x layout op plus the
    pallas_call (no per-call transposes / casts / bias adds).
    """
    H = params["w_hh"].shape[0]
    return {
        "wih_t": jnp.asarray(params["w_ih"].T, jnp.float32),          # (I, H)
        "whh_t": jnp.asarray(params["w_hh"].T, jnp.float32),          # (H, H)
        "b": (params["b_ih"] + params["b_hh"]).reshape(1, H)
             .astype(jnp.float32),                                    # (1, H)
        "fcw_t": jnp.asarray(params["fc_w"].T, jnp.float32),          # (H, 1)
        "fcb": params["fc_b"].reshape(1, 1).astype(jnp.float32),      # (1, 1)
    }


def _reference_forward(x, params, h0):
    """Pure-JAX reference (lax.scan) for correctness checking."""
    wih_t = params["w_ih"].T
    whh_t = params["w_hh"].T
    b = params["b_ih"] + params["b_hh"]

    def step(h, x_t):
        h_new = jnp.tanh(x_t @ wih_t + h @ whh_t + b)
        return h_new, None

    h_last, _ = jax.lax.scan(step, h0[0], jnp.transpose(x, (1, 0, 2)))
    return h_last @ params["fc_w"].T + params["fc_b"]


if __name__ == "__main__":
    key = jax.random.PRNGKey(0)
    k_param, k_x, k_h = jax.random.split(key, 3)

    batch, seq, input_size, hidden_dim = 2, 8, 4, 32
    n_layers = 1

    params = init_params(k_param, input_size, hidden_dim)
    kparams = bake_kernel_params(params)

    x = jax.random.normal(k_x, (batch, seq, input_size), jnp.float32)
    # torch.rand analog for the initial hidden state (deterministic here):
    h0 = jax.random.uniform(k_h, (n_layers, batch, hidden_dim), jnp.float32)

    out = protein_rnn_forward(x, kparams, h0,
                              input_size=input_size, hidden_dim=hidden_dim)
    out = jax.block_until_ready(out)

    ref = _reference_forward(x, params, h0)
    np.testing.assert_allclose(np.asarray(out), np.asarray(ref),
                               rtol=1e-5, atol=1e-5)
    assert out.shape == (batch, 1)
    print("KERNEL_OK")
</pallas_src>

<mosaic_0001>
module attributes {stable_mosaic.version = 11 : i64} {
  func.func @_rnn_kernel(%arg0: memref<64x4xf32, #tpu.memory_space<vmem>>, %arg1: memref<4x32xf32, #tpu.memory_space<vmem>>, %arg2: memref<32x32xf32, #tpu.memory_space<vmem>>, %arg3: memref<1x32xf32, #tpu.memory_space<vmem>>, %arg4: memref<8x32xf32, #tpu.memory_space<vmem>>, %arg5: memref<32x1xf32, #tpu.memory_space<vmem>>, %arg6: memref<1x1xf32, #tpu.memory_space<vmem>>, %arg7: memref<8x1xf32, #tpu.memory_space<vmem>>) attributes {dimension_semantics = [], scalar_prefetch = 0 : i64, scratch_operands = 0 : i64, tpu.core_type = #tpu.core_type<tc>} {
    %c0 = arith.constant 0 : index
    %c0_0 = arith.constant 0 : index
    %0 = vector.load %arg1[%c0, %c0_0] : memref<4x32xf32, #tpu.memory_space<vmem>>, vector<4x32xf32>
    %c0_1 = arith.constant 0 : index
    %c0_2 = arith.constant 0 : index
    %1 = vector.load %arg2[%c0_1, %c0_2] : memref<32x32xf32, #tpu.memory_space<vmem>>, vector<32x32xf32>
    %c0_3 = arith.constant 0 : index
    %c0_4 = arith.constant 0 : index
    %2 = vector.load %arg3[%c0_3, %c0_4] : memref<1x32xf32, #tpu.memory_space<vmem>>, vector<1x32xf32>
    %c0_5 = arith.constant 0 : index
    %c0_6 = arith.constant 0 : index
    %3 = vector.load %arg0[%c0_5, %c0_6] : memref<64x4xf32, #tpu.memory_space<vmem>>, vector<64x4xf32>
    %cst = arith.constant dense<0.000000e+00> : vector<64x32xf32>
    %4 = tpu.matmul %3, %0, %cst {dimension_numbers = #tpu.dot_dimension_numbers<[1], [0], [0], [1], [0, 0, 1, 1], [], []>} : vector<64x4xf32>, vector<4x32xf32>, vector<64x32xf32> -> vector<64x32xf32>
    %5 = vector.broadcast %2 : vector<1x32xf32> to vector<64x32xf32>
    %6 = arith.addf %4, %5 : vector<64x32xf32>
    %c0_7 = arith.constant 0 : index
    %c0_8 = arith.constant 0 : index
    %7 = vector.load %arg4[%c0_7, %c0_8] : memref<8x32xf32, #tpu.memory_space<vmem>>, vector<8x32xf32>
    %8 = vector.extract_strided_slice %6 {offsets = [0, 0], sizes = [8, 32], strides = [1, 1]} : vector<64x32xf32> to vector<8x32xf32>
    %cst_9 = arith.constant dense<0.000000e+00> : vector<8x32xf32>
    %9 = tpu.matmul %7, %1, %cst_9 {dimension_numbers = #tpu.dot_dimension_numbers<[1], [0], [0], [1], [0, 0, 1, 1], [], []>} : vector<8x32xf32>, vector<32x32xf32>, vector<8x32xf32> -> vector<8x32xf32>
    %10 = arith.addf %8, %9 : vector<8x32xf32>
    %11 = math.tanh %10 : vector<8x32xf32>
    %12 = vector.extract_strided_slice %6 {offsets = [8, 0], sizes = [8, 32], strides = [1, 1]} : vector<64x32xf32> to vector<8x32xf32>
    %cst_10 = arith.constant dense<0.000000e+00> : vector<8x32xf32>
    %13 = tpu.matmul %11, %1, %cst_10 {dimension_numbers = #tpu.dot_dimension_numbers<[1], [0], [0], [1], [0, 0, 1, 1], [], []>} : vector<8x32xf32>, vector<32x32xf32>, vector<8x32xf32> -> vector<8x32xf32>
    %14 = arith.addf %12, %13 : vector<8x32xf32>
    %15 = math.tanh %14 : vector<8x32xf32>
    %16 = vector.extract_strided_slice %6 {offsets = [16, 0], sizes = [8, 32], strides = [1, 1]} : vector<64x32xf32> to vector<8x32xf32>
    %cst_11 = arith.constant dense<0.000000e+00> : vector<8x32xf32>
    %17 = tpu.matmul %15, %1, %cst_11 {dimension_numbers = #tpu.dot_dimension_numbers<[1], [0], [0], [1], [0, 0, 1, 1], [], []>} : vector<8x32xf32>, vector<32x32xf32>, vector<8x32xf32> -> vector<8x32xf32>
    %18 = arith.addf %16, %17 : vector<8x32xf32>
    %19 = math.tanh %18 : vector<8x32xf32>
    %20 = vector.extract_strided_slice %6 {offsets = [24, 0], sizes = [8, 32], strides = [1, 1]} : vector<64x32xf32> to vector<8x32xf32>
    %cst_12 = arith.constant dense<0.000000e+00> : vector<8x32xf32>
    %21 = tpu.matmul %19, %1, %cst_12 {dimension_numbers = #tpu.dot_dimension_numbers<[1], [0], [0], [1], [0, 0, 1, 1], [], []>} : vector<8x32xf32>, vector<32x32xf32>, vector<8x32xf32> -> vector<8x32xf32>
    %22 = arith.addf %20, %21 : vector<8x32xf32>
    %23 = math.tanh %22 : vector<8x32xf32>
    %24 = vector.extract_strided_slice %6 {offsets = [32, 0], sizes = [8, 32], strides = [1, 1]} : vector<64x32xf32> to vector<8x32xf32>
    %cst_13 = arith.constant dense<0.000000e+00> : vector<8x32xf32>
    %25 = tpu.matmul %23, %1, %cst_13 {dimension_numbers = #tpu.dot_dimension_numbers<[1], [0], [0], [1], [0, 0, 1, 1], [], []>} : vector<8x32xf32>, vector<32x32xf32>, vector<8x32xf32> -> vector<8x32xf32>
    %26 = arith.addf %24, %25 : vector<8x32xf32>
    %27 = math.tanh %26 : vector<8x32xf32>
    %28 = vector.extract_strided_slice %6 {offsets = [40, 0], sizes = [8, 32], strides = [1, 1]} : vector<64x32xf32> to vector<8x32xf32>
    %cst_14 = arith.constant dense<0.000000e+00> : vector<8x32xf32>
    %29 = tpu.matmul %27, %1, %cst_14 {dimension_numbers = #tpu.dot_dimension_numbers<[1], [0], [0], [1], [0, 0, 1, 1], [], []>} : vector<8x32xf32>, vector<32x32xf32>, vector<8x32xf32> -> vector<8x32xf32>
    %30 = arith.addf %28, %29 : vector<8x32xf32>
    %31 = math.tanh %30 : vector<8x32xf32>
    %32 = vector.extract_strided_slice %6 {offsets = [48, 0], sizes = [8, 32], strides = [1, 1]} : vector<64x32xf32> to vector<8x32xf32>
    %cst_15 = arith.constant dense<0.000000e+00> : vector<8x32xf32>
    %33 = tpu.matmul %31, %1, %cst_15 {dimension_numbers = #tpu.dot_dimension_numbers<[1], [0], [0], [1], [0, 0, 1, 1], [], []>} : vector<8x32xf32>, vector<32x32xf32>, vector<8x32xf32> -> vector<8x32xf32>
    %34 = arith.addf %32, %33 : vector<8x32xf32>
    %35 = math.tanh %34 : vector<8x32xf32>
    %36 = vector.extract_strided_slice %6 {offsets = [56, 0], sizes = [8, 32], strides = [1, 1]} : vector<64x32xf32> to vector<8x32xf32>
    %cst_16 = arith.constant dense<0.000000e+00> : vector<8x32xf32>
    %37 = tpu.matmul %35, %1, %cst_16 {dimension_numbers = #tpu.dot_dimension_numbers<[1], [0], [0], [1], [0, 0, 1, 1], [], []>} : vector<8x32xf32>, vector<32x32xf32>, vector<8x32xf32> -> vector<8x32xf32>
    %38 = arith.addf %36, %37 : vector<8x32xf32>
    %39 = math.tanh %38 : vector<8x32xf32>
    %c0_17 = arith.constant 0 : index
    %c0_18 = arith.constant 0 : index
    %40 = vector.load %arg5[%c0_17, %c0_18] : memref<32x1xf32, #tpu.memory_space<vmem>>, vector<32x1xf32>
    %cst_19 = arith.constant dense<0.000000e+00> : vector<8x1xf32>
    %41 = tpu.matmul %39, %40, %cst_19 {dimension_numbers = #tpu.dot_dimension_numbers<[1], [0], [0], [1], [0, 0, 1, 1], [], []>} : vector<8x32xf32>, vector<32x1xf32>, vector<8x1xf32> -> vector<8x1xf32>
    %c0_20 = arith.constant 0 : index
    %c0_21 = arith.constant 0 : index
    %42 = vector.load %arg6[%c0_20, %c0_21] : memref<1x1xf32, #tpu.memory_space<vmem>>, vector<1x1xf32>
    %43 = vector.broadcast %42 : vector<1x1xf32> to vector<8x1xf32>
    %44 = arith.addf %41, %43 : vector<8x1xf32>
    %c0_22 = arith.constant 0 : index
    %c0_23 = arith.constant 0 : index
    %45 = vector.load %arg7[%c0_22, %c0_23] : memref<8x1xf32, #tpu.memory_space<vmem>>, vector<8x1xf32>
    tpu.vector_store %arg7[%c0_22, %c0_23], %44 {strides = array<i32>} : memref<8x1xf32, #tpu.memory_space<vmem>>, vector<8x1xf32>,
    return
  }
}

</mosaic_0001>

<bundles_post_ra>
// kernel: protein_rnn_forward.1
= control target key start
LH: loop header
LB: loop body
LE: loop exit
PB: predicated region body
PF: predicated region fallthrough
CT: control target
= control target key end

     0   :  { %vm70_vm0 = vcmask 1043456   ;;  %vm45_vm1 = vcmask 31744   ;;  %vm116_vm2 = vcmask 261120   ;;  %vm348_vm3 = vcmask 7168   ;;  %s522_s1 = inlined_call_operand.vmem [shape: f32[4,32], index: 1, kind: input, shape index: {}]   ;;  %s523_s0 = inlined_call_operand.vmem [shape: f32[64,4], index: 0, kind: input, shape index: {}]   ;;  %s524_s2 = inlined_call_operand.vmem [shape: f32[32,32], index: 2, kind: input, shape index: {}]   ;;  %s525_s3 = inlined_call_operand.vmem [shape: f32[1,32], index: 3, kind: input, shape index: {}]   ;;  %s526_s4 = inlined_call_operand.vmem [shape: f32[8,32], index: 4, kind: input, shape index: {}]   ;;  %s527_s5 = inlined_call_operand.vmem [shape: f32[32,1], index: 5, kind: input, shape index: {}]   ;;  %s528_s6 = inlined_call_operand.<no memory space> [shape: f32[1,1], index: 6, kind: input, shape index: {}]   ;;  %s529_s7 = inlined_call_operand.vmem [shape: f32[8,1], index: 7, kind: output, shape index: {}]  }
   0x1   :  { %v28_v0 = vld [vmem:[%s522_s1] sm:$0xf]  ;;  %v39_v1 = vld [vmem:[%s523_s0 + $0x28] sm:$0xff]  ;;  %v32_v2 = vld [vmem:[%s524_s2 + $0x18] sm:$0xff]  ;;  %v12_v55 = vstv %s528_s6 }
   0x2   :  { %372 = vmatpush.msk.msra.mxu1 %vm70_vm0, %v28_v0  ;;  %354 = vmatpush.msk.msra.mxu0 %vm70_vm0, %v28_v0  ;;  %v34_v3 = vld [vmem:[%s523_s0] sm:$0xff]  ;;  %v31_v4 = vld [vmem:[%s524_s2 + $0x10] sm:$0xff]  ;;  %v30_v5 = vld [vmem:[%s524_s2 + $0x8] sm:$0xff]  ;;  %13 = vst [vmem:[#allocation2] sm:$0x1] %v12_v55 }
   0x3   :  { %360 = vmatmul.msk.f32.vlgmr.msra.gmra.mxu1 %vm45_vm1, %v39_v1  ;;  %355 = vmatmul.msk.f32.vlgmr.msra.gmra.mxu0 %vm45_vm1, %v34_v3  ;;  %v29_v6 = vld [vmem:[%s524_s2] sm:$0xff]  ;;  %v40_v8 = vld [vmem:[%s523_s0 + $0x30] sm:$0xff]  ;;  %v41_v9 = vld [vmem:[%s523_s0 + $0x38] sm:$0xff] }
   0x4   :  { %132 = vmatpush.msrb.mxu1 %v32_v2  ;;  %373 = vmatpush.msk.msra.mxu2 %vm70_vm0, %v28_v0  ;;  %v115_v7 = vld [vmem:[%s526_s4] sm:$0xff]  ;;  %v35_v10 = vld [vmem:[%s523_s0 + $0x8] sm:$0xff]  ;;  %v36_v18 = vld [vmem:[%s523_s0 + $0x10] sm:$0xff] }
   0x5   :  { %182 = vmatpush.msra.mxu3 %v32_v2  ;;  %361 = vmatmul.msk.f32.vlgmr.msra.gmra.mxu2 %vm45_vm1, %v40_v8  ;;  %v474_v13 = vld [vmem:[%s525_s3] ss:$0 sm:$0xff]  ;;  %v37_v26 = vld [vmem:[%s523_s0 + $0x18] sm:$0xff]  ;;  %v319_v52 = vld [vmem:[%s527_s5 + $0x10] sm:$0xff] }
   0x6   :  { %157 = vmatpush.msrb.mxu2 %v32_v2  ;;  %133 = vmatpush.msrb.mxu1 %v31_v4  ;;  %v38_v32 = vld [vmem:[%s523_s0 + $0x20] sm:$0xff]  ;;  %v320_v51 = vld [vmem:[%s527_s5 + $0x18] sm:$0xff]  ;;  %v318_v53 = vld [vmem:[%s527_s5 + $0x8] sm:$0xff] }
   0x7   :  { %183 = vmatpush.msra.mxu3 %v31_v4  ;;  %v317_v54 = vld [vmem:[%s527_s5] sm:$0xff] }
   0x8   :  { %158 = vmatpush.msrb.mxu2 %v31_v4  ;;  %134 = vmatpush.msrb.mxu1 %v30_v5 }
   0x9   :  { %184 = vmatpush.msra.mxu3 %v30_v5  ;;  %v375_v60 = vld [vmem:[#allocation2] ss:$0 sm:$0xff] }
   0xa   :  { %159 = vmatpush.msrb.mxu2 %v30_v5  ;;  %135 = vmatpush.msrb.mxu1 %v29_v6 }
   0xb   :  { %363 = vmatmul.msk.f32.vlgmr.msrb.gmra.mxu1 %vm116_vm2, %v115_v7  ;;  %185 = vmatpush.msra.mxu3 %v29_v6 }
   0xc   :  { %160 = vmatpush.msrb.mxu2 %v29_v6  ;;  %207 = vmatpush.msra.mxu1 %v32_v2 }
   0xd   :  { %257 = vmatpush.msrb.mxu3 %v32_v2  ;;  %362 = vmatmul.msk.f32.gmra.mxu2 %vm45_vm1, %v41_v9 }
   0xe   :  { %208 = vmatpush.msra.mxu1 %v31_v4  ;;  %232 = vmatpush.msra.mxu2 %v32_v2 }
   0xf   :  { %258 = vmatpush.msrb.mxu3 %v31_v4  ;;  %356 = vmatmul.msk.f32.gmra.mxu0 %vm45_vm1, %v35_v10 }
  0x10   :  { %209 = vmatpush.msra.mxu1 %v30_v5  ;;  %233 = vmatpush.msra.mxu2 %v31_v4 }
  0x11   :  { %259 = vmatpush.msrb.mxu3 %v30_v5 }
  0x12   :  { %210 = vmatpush.msra.mxu1 %v29_v6  ;;  %234 = vmatpush.msra.mxu2 %v30_v5 }
  0x13   :  { %260 = vmatpush.msrb.mxu3 %v29_v6 }
  0x14   :  { %282 = vmatpush.msrb.mxu1 %v32_v2  ;;  %235 = vmatpush.msra.mxu2 %v29_v6 }
  0x16   :  { %283 = vmatpush.msrb.mxu1 %v31_v4 }
  0x17   :  { %357 = vmatmul.msk.f32.gmra.mxu0 %vm45_vm1, %v36_v18 }
  0x18   :  { %284 = vmatpush.msrb.mxu1 %v30_v5 }
  0x1a   :  { %285 = vmatpush.msrb.mxu1 %v29_v6 }
  0x1f   :  { %358 = vmatmul.msk.f32.gmra.mxu0 %vm45_vm1, %v37_v26 }
  0x27   :  { %359 = vmatmul.msk.f32.gmra.mxu0 %vm45_vm1, %v38_v32 }
  0x80   :  { %v106_v11 = vpop.f32.mrf.mxu1  ;;  %v91_v12 = vpop.f32.mrf.mxu0 }
  0x81   :  { %v92_v14 = vadd.f32 %v474_v13, %v91_v12  ;;  %v107_v43 = vadd.f32 %v474_v13, %v106_v11 }
  0x88   :  { %v137_v15 = vpop.f32.mrf.mxu1  ;;  %v109_v19 = vpop.f32.mrf.mxu2 }
  0x89   :  { %v140_v16 = vadd.f32 %v137_v15, %v92_v14  ;;  %v110_v47 = vadd.f32 %v474_v13, %v109_v19 }
  0x8b   :  { %376 = vtanh.f32 %v140_v16 }
  0x8c   :  { %v94_v21 = vpop.f32.mrf.mxu0 }
  0x8d   :  { %v95_v22 = vadd.f32 %v474_v13, %v94_v21 }
  0x90   :  { %v112_v20 = vpop.f32.mrf.mxu2 }
  0x91   :  { %v377_v17 = vpop.eup %376  ;;  %v113_v56 = vadd.f32 %v474_v13, %v112_v20 }
  0x92   :  { %364 = vmatmul.msk.f32.vlgmr.msrb.gmra.mxu2 %vm116_vm2, %v377_v17 }
  0x93   :  { %307 = vmatpush.msrb.mxu2 %v32_v2 }
  0x94   :  { %v97_v27 = vpop.f32.mrf.mxu0 }
  0x95   :  { %308 = vmatpush.msrb.mxu2 %v31_v4  ;;  %v98_v28 = vadd.f32 %v474_v13, %v97_v27 }
  0x97   :  { %309 = vmatpush.msrb.mxu2 %v30_v5 }
  0x99   :  { %310 = vmatpush.msrb.mxu2 %v29_v6 }
  0x9c   :  { %v100_v33 = vpop.f32.mrf.mxu0 }
  0x9d   :  { %v101_v34 = vadd.f32 %v474_v13, %v100_v33 }
  0xa4   :  { %v103_v38 = vpop.f32.mrf.mxu0 }
  0xa5   :  { %v104_v39 = vadd.f32 %v474_v13, %v103_v38 }
 0x115   :  { %v162_v23 = vpop.f32.mrf.mxu2 }
 0x116   :  { %v165_v24 = vadd.f32 %v162_v23, %v95_v22 }
 0x118   :  { %378 = vtanh.f32 %v165_v24 }
 0x11e   :  { %v379_v25 = vpop.eup %378 }
 0x11f   :  { %365 = vmatmul.msk.f32.vlgmr.msra.gmra.mxu3 %vm116_vm2, %v379_v25 }
 0x120   :  { %340 = vmatpush.msra.mxu3 %v320_v51 }
 0x122   :  { %341 = vmatpush.msra.mxu3 %v319_v52 }
 0x124   :  { %342 = vmatpush.msra.mxu3 %v318_v53 }
 0x126   :  { %343 = vmatpush.msra.mxu3 %v317_v54 }
 0x1a2   :  { %v187_v29 = vpop.f32.mrf.mxu3 }
 0x1a3   :  { %v190_v30 = vadd.f32 %v187_v29, %v98_v28 }
 0x1a5   :  { %380 = vtanh.f32 %v190_v30 }
 0x1ab   :  { %v381_v31 = vpop.eup %380 }
 0x1ac   :  { %366 = vmatmul.msk.f32.vlgmr.msra.gmra.mxu1 %vm116_vm2, %v381_v31 }
 0x229   :  { %v212_v35 = vpop.f32.mrf.mxu1 }
 0x22a   :  { %v215_v36 = vadd.f32 %v212_v35, %v101_v34 }
 0x22c   :  { %382 = vtanh.f32 %v215_v36 }
 0x232   :  { %v383_v37 = vpop.eup %382 }
 0x233   :  { %367 = vmatmul.msk.f32.vlgmr.msra.gmra.mxu2 %vm116_vm2, %v383_v37 }
 0x2b6   :  { %v237_v40 = vpop.f32.mrf.mxu2 }
 0x2b7   :  { %v240_v41 = vadd.f32 %v237_v40, %v104_v39 }
 0x2b9   :  { %384 = vtanh.f32 %v240_v41 }
 0x2bf   :  { %v385_v42 = vpop.eup %384 }
 0x2c0   :  { %368 = vmatmul.msk.f32.vlgmr.msrb.gmra.mxu3 %vm116_vm2, %v385_v42 }
 0x343   :  { %v262_v44 = vpop.f32.mrf.mxu3 }
 0x344   :  { %v265_v45 = vadd.f32 %v262_v44, %v107_v43 }
 0x346   :  { %386 = vtanh.f32 %v265_v45 }
 0x34c   :  { %v387_v46 = vpop.eup %386 }
 0x34d   :  { %369 = vmatmul.msk.f32.vlgmr.msrb.gmra.mxu1 %vm116_vm2, %v387_v46 }
 0x3ca   :  { %v287_v48 = vpop.f32.mrf.mxu1 }
 0x3cb   :  { %v290_v49 = vadd.f32 %v287_v48, %v110_v47 }
 0x3cd   :  { %388 = vtanh.f32 %v290_v49 }
 0x3d3   :  { %v389_v50 = vpop.eup %388 }
 0x3d4   :  { %370 = vmatmul.msk.f32.vlgmr.msrb.gmra.mxu2 %vm116_vm2, %v389_v50 }
 0x457   :  { %v312_v57 = vpop.f32.mrf.mxu2 }
 0x458   :  { %v315_v58 = vadd.f32 %v312_v57, %v113_v56 }
 0x45a   :  { %390 = vtanh.f32 %v315_v58 }
 0x460   :  { %v391_v59 = vpop.eup %390 }
 0x461   :  { %371 = vmatmul.msk.f32.vlgmr.msra.gmra.mxu3 %vm116_vm2, %v391_v59 }
 0x4e4   :  { %v345_v61 = vpop.f32.mrf.mxu3 }
 0x4e5   :  { %v346_v62 = vadd.f32 %v375_v60, %v345_v61 }
 0x4e7   :  { %349 = vst.msk [vmem:[%s529_s7] sm:$0xff] %vm348_vm3, %v346_v62 }

</bundles_post_ra>
